<compile_context>
chip_gen: v7x
topology: tpu7x:2x2x1
jax: 0.10.0
libtpu: 0.0.40
codegen_flags: <defaults>
</compile_context>

<pallas_src>
import functools

import jax
import jax.numpy as jnp
from jax.experimental import pallas as pl
from jax.experimental.pallas import tpu as pltpu


def _fusion_kernel(x2d_ref, x3d_ref, w2d_ref, w3d_ref, b_ref, o_ref, *, bn):
    # x2d_ref: (bn, C2d, thw)   x3d_ref: (bn, C3d, thw)
    # w2d_ref: (Cout, C2d)      w3d_ref: (Cout, C3d)     b_ref: (Cout, 1)
    # o_ref:   (bn, Cout, thw)  -- lane-dense along the spatial tile.
    w2d = w2d_ref[...]
    w3d = w3d_ref[...]
    bias = b_ref[...]                      # (Cout, 1): broadcasts over lanes

    def compute_row(i):
        acc = jnp.dot(w2d, x2d_ref[i], preferred_element_type=jnp.float32)
        acc = acc + jnp.dot(w3d, x3d_ref[i], preferred_element_type=jnp.float32)
        acc = acc + bias
        # LeakyReLU(0.1): single vmax instead of cmp+select.
        o_ref[i] = jnp.maximum(acc, 0.1 * acc).astype(o_ref.dtype)

    if bn <= 8:
        # Small batch-pack: unroll statically.
        for i in range(bn):
            compute_row(i)
    else:
        # Larger batch-pack: keep live ranges bounded with a real loop.
        @pl.loop(0, bn)
        def _(i):
            compute_row(i)


def concat_fusion_nchw(feat_2d, feat_3d, w, b, *, out_dtype=None,
                       vmem_block_budget=20 << 20, max_cols=32768):
    """feat_2d: [N, C2d, H, W], feat_3d: [N, C3d, H, W] (NCHW, like PyTorch).

    w: [Cout, C2d + C3d] (1x1 conv weight, squeezed), b: [Cout].
    Returns [N, Cout, H, W] in `out_dtype` (default: input dtype; pass
    jnp.bfloat16 to halve the dominant output HBM traffic).
    """
    N, C2d, H, W = feat_2d.shape
    N3, C3d, H3, W3 = feat_3d.shape
    assert (N3, H3, W3) == (N, H, W), "feat_2d / feat_3d spatial mismatch"
    Cout = w.shape[0]
    HW = H * W
    if out_dtype is None:
        out_dtype = feat_2d.dtype

    # Free reshapes only — data stays in NCHW order, no extra HBM passes.
    x2d = feat_2d.reshape(N, C2d, HW)
    x3d = feat_3d.reshape(N, C3d, HW)

    # Split the concat weight (tiny) — contraction stays (Cout, C) @ (C, thw).
    w2d = w[:, :C2d]                 # (Cout, C2d)
    w3d = w[:, C2d:]                 # (Cout, C3d)
    b2 = b.reshape(Cout, 1)

    # ---- Tile sizing: VMEM-budget-derived, HBM-overhead-amortizing. -------
    in_itemsize = jnp.dtype(feat_2d.dtype).itemsize
    out_itemsize = jnp.dtype(out_dtype).itemsize
    # HBM bytes moved per spatial column per buffer (inputs + output).
    bytes_per_col = in_itemsize * (C2d + C3d) + out_itemsize * Cout
    cols_budget = max(128, vmem_block_budget // (2 * bytes_per_col))
    target_cols = int(min(max_cols, cols_budget))   # bn * tile_hw per step

    if HW >= target_cols:
        # Large feature map: one batch element per block, big 128-aligned
        # spatial tile (clipped partial tail block handles the remainder).
        tile_hw = min(HW, max(128, (target_cols // 128) * 128))
        bn = 1
    else:
        # Small feature map: take the full spatial extent and pack multiple
        # batch elements per block so each grid step still moves real traffic.
        tile_hw = HW
        bn = max(1, min(N, target_cols // max(HW, 1)))

    grid = (pl.cdiv(N, bn), pl.cdiv(HW, tile_hw))

    # Advisory cost hint: bandwidth-heavy custom call.
    flops = 2 * N * HW * (C2d + C3d) * Cout + 3 * N * HW * Cout
    bytes_accessed = (in_itemsize * N * HW * (C2d + C3d)
                      + out_itemsize * N * HW * Cout
                      + 4 * (Cout * (C2d + C3d) + Cout))
    cost = pl.CostEstimate(flops=flops, transcendentals=0,
                           bytes_accessed=bytes_accessed)

    kernel = functools.partial(_fusion_kernel, bn=bn)

    out = pl.pallas_call(
        kernel,
        out_shape=jax.ShapeDtypeStruct((N, Cout, HW), out_dtype),
        grid_spec=pltpu.PrefetchScalarGridSpec(
            num_scalar_prefetch=0,
            grid=grid,
            in_specs=[
                pl.BlockSpec((bn, C2d, tile_hw), lambda n, s: (n, 0, s)),
                pl.BlockSpec((bn, C3d, tile_hw), lambda n, s: (n, 0, s)),
                pl.BlockSpec((Cout, C2d), lambda n, s: (0, 0)),
                pl.BlockSpec((Cout, C3d), lambda n, s: (0, 0)),
                pl.BlockSpec((Cout, 1), lambda n, s: (0, 0)),
            ],
            out_specs=pl.BlockSpec((bn, Cout, tile_hw), lambda n, s: (n, 0, s)),
        ),
        compiler_params=pltpu.CompilerParams(
            dimension_semantics=("parallel", "parallel"),
            # Raise the scoped-VMEM ceiling (v5e default is 16 MiB) so the
            # large tiles compile; actual use stays ~<=22 MiB double-buffered,
            # well under v7x's 64 MiB physical VMEM.
            vmem_limit_bytes=48 << 20,
        ),
        cost_estimate=cost,
    )(x2d, x3d, w2d, w3d, b2)

    # Free reshape back to NCHW.
    return out.reshape(N, Cout, H, W)


def _reference(feat_2d, feat_3d, w, b):
    x = jnp.concatenate([feat_2d, feat_3d], axis=1)          # [N, Cin, H, W]
    y = jnp.einsum("nchw,oc->nohw", x, w) + b[None, :, None, None]
    return jnp.where(y > 0, y, 0.1 * y)


if __name__ == "__main__":
    # Small shapes consistent with the module: batch=2, in_channels_2d=4,
    # in_channels_3d=4, out_channels=32, spatial 16x16.
    N, C2d, C3d, Cout, H, W = 2, 4, 4, 32, 16, 16

    key = jax.random.PRNGKey(0)
    k1, k2, k3, k4 = jax.random.split(key, 4)
    feat_2d = jax.random.normal(k1, (N, C2d, H, W), dtype=jnp.float32)
    feat_3d = jax.random.normal(k2, (N, C3d, H, W), dtype=jnp.float32)

    # Deterministic parameter init (1x1 conv weight + bias).
    w = 0.1 * jax.random.normal(k3, (Cout, C2d + C3d), dtype=jnp.float32)
    b = 0.05 * jax.random.normal(k4, (Cout,), dtype=jnp.float32)

    out = concat_fusion_nchw(feat_2d, feat_3d, w, b)
    out = jax.block_until_ready(out)

    ref = _reference(feat_2d, feat_3d, w, b)
    assert out.shape == (N, Cout, H, W)
    assert jnp.allclose(out, ref, atol=1e-5, rtol=1e-5), "mismatch vs reference"

    print("KERNEL_OK")
</pallas_src>

<mosaic_0001>
module attributes {stable_mosaic.version = 11 : i64} {
  func.func @_fusion_kernel(%arg0: i32, %arg1: i32, %arg2: memref<2x4x256xf32, #tpu.memory_space<vmem>>, %arg3: memref<2x4x256xf32, #tpu.memory_space<vmem>>, %arg4: memref<32x4xf32, #tpu.memory_space<vmem>>, %arg5: memref<32x4xf32, #tpu.memory_space<vmem>>, %arg6: memref<32x1xf32, #tpu.memory_space<vmem>>, %arg7: memref<2x32x256xf32, #tpu.memory_space<vmem>>) attributes {dimension_semantics = [#tpu.dimension_semantics<parallel>, #tpu.dimension_semantics<parallel>], iteration_bounds = array<i64: 1, 1>, scalar_prefetch = 0 : i64, scratch_operands = 0 : i64, tpu.core_type = #tpu.core_type<tc>, window_params = [{transform_indices = @transform_0, window_bounds = array<i64: 2, 4, 256>}, {transform_indices = @transform_1, window_bounds = array<i64: 2, 4, 256>}, {pipeline_mode = #tpu.pipeline_mode<synchronous>, transform_indices = @transform_2, window_bounds = array<i64: 32, 4>}, {pipeline_mode = #tpu.pipeline_mode<synchronous>, transform_indices = @transform_3, window_bounds = array<i64: 32, 4>}, {pipeline_mode = #tpu.pipeline_mode<synchronous>, transform_indices = @transform_4, window_bounds = array<i64: 32, 1>}, {transform_indices = @transform_5, window_bounds = array<i64: 2, 32, 256>}]} {
    %c0 = arith.constant 0 : index
    %c0_0 = arith.constant 0 : index
    %0 = vector.load %arg4[%c0, %c0_0] : memref<32x4xf32, #tpu.memory_space<vmem>>, vector<32x4xf32>
    %c0_1 = arith.constant 0 : index
    %c0_2 = arith.constant 0 : index
    %1 = vector.load %arg5[%c0_1, %c0_2] : memref<32x4xf32, #tpu.memory_space<vmem>>, vector<32x4xf32>
    %c0_3 = arith.constant 0 : index
    %c0_4 = arith.constant 0 : index
    %2 = vector.load %arg6[%c0_3, %c0_4] : memref<32x1xf32, #tpu.memory_space<vmem>>, vector<32x1xf32>
    %c0_5 = arith.constant 0 : index
    %c0_6 = arith.constant 0 : index
    %c0_7 = arith.constant 0 : index
    %3 = vector.load %arg2[%c0_5, %c0_6, %c0_7] : memref<2x4x256xf32, #tpu.memory_space<vmem>>, vector<1x4x256xf32>
    %4 = vector.shape_cast %3 : vector<1x4x256xf32> to vector<4x256xf32>
    %cst = arith.constant dense<0.000000e+00> : vector<32x256xf32>
    %5 = tpu.matmul %0, %4, %cst {dimension_numbers = #tpu.dot_dimension_numbers<[1], [0], [0], [1], [0, 0, 1, 1], [], []>} : vector<32x4xf32>, vector<4x256xf32>, vector<32x256xf32> -> vector<32x256xf32>
    %c0_8 = arith.constant 0 : index
    %c0_9 = arith.constant 0 : index
    %c0_10 = arith.constant 0 : index
    %6 = vector.load %arg3[%c0_8, %c0_9, %c0_10] : memref<2x4x256xf32, #tpu.memory_space<vmem>>, vector<1x4x256xf32>
    %7 = vector.shape_cast %6 : vector<1x4x256xf32> to vector<4x256xf32>
    %cst_11 = arith.constant dense<0.000000e+00> : vector<32x256xf32>
    %8 = tpu.matmul %1, %7, %cst_11 {dimension_numbers = #tpu.dot_dimension_numbers<[1], [0], [0], [1], [0, 0, 1, 1], [], []>} : vector<32x4xf32>, vector<4x256xf32>, vector<32x256xf32> -> vector<32x256xf32>
    %9 = arith.addf %5, %8 : vector<32x256xf32>
    %10 = vector.broadcast %2 : vector<32x1xf32> to vector<32x256xf32>
    %11 = arith.addf %9, %10 : vector<32x256xf32>
    %cst_12 = arith.constant 1.000000e-01 : f32
    %12 = vector.broadcast %cst_12 : f32 to vector<32x256xf32>
    %13 = arith.mulf %12, %11 : vector<32x256xf32>
    %14 = arith.maximumf %11, %13 : vector<32x256xf32>
    %c0_13 = arith.constant 0 : index
    %c0_14 = arith.constant 0 : index
    %c0_15 = arith.constant 0 : index
    %15 = vector.load %arg7[%c0_13, %c0_14, %c0_15] : memref<2x32x256xf32, #tpu.memory_space<vmem>>, vector<1x32x256xf32>
    %16 = vector.shape_cast %15 : vector<1x32x256xf32> to vector<32x256xf32>
    %17 = vector.shape_cast %14 : vector<32x256xf32> to vector<1x32x256xf32>
    tpu.vector_store %arg7[%c0_13, %c0_14, %c0_15], %17 {strides = array<i32>} : memref<2x32x256xf32, #tpu.memory_space<vmem>>, vector<1x32x256xf32>,
    %c1 = arith.constant 1 : index
    %c0_16 = arith.constant 0 : index
    %c0_17 = arith.constant 0 : index
    %18 = vector.load %arg2[%c1, %c0_16, %c0_17] : memref<2x4x256xf32, #tpu.memory_space<vmem>>, vector<1x4x256xf32>
    %19 = vector.shape_cast %18 : vector<1x4x256xf32> to vector<4x256xf32>
    %cst_18 = arith.constant dense<0.000000e+00> : vector<32x256xf32>
    %20 = tpu.matmul %0, %19, %cst_18 {dimension_numbers = #tpu.dot_dimension_numbers<[1], [0], [0], [1], [0, 0, 1, 1], [], []>} : vector<32x4xf32>, vector<4x256xf32>, vector<32x256xf32> -> vector<32x256xf32>
    %c1_19 = arith.constant 1 : index
    %c0_20 = arith.constant 0 : index
    %c0_21 = arith.constant 0 : index
    %21 = vector.load %arg3[%c1_19, %c0_20, %c0_21] : memref<2x4x256xf32, #tpu.memory_space<vmem>>, vector<1x4x256xf32>
    %22 = vector.shape_cast %21 : vector<1x4x256xf32> to vector<4x256xf32>
    %cst_22 = arith.constant dense<0.000000e+00> : vector<32x256xf32>
    %23 = tpu.matmul %1, %22, %cst_22 {dimension_numbers = #tpu.dot_dimension_numbers<[1], [0], [0], [1], [0, 0, 1, 1], [], []>} : vector<32x4xf32>, vector<4x256xf32>, vector<32x256xf32> -> vector<32x256xf32>
    %24 = arith.addf %20, %23 : vector<32x256xf32>
    %25 = vector.broadcast %2 : vector<32x1xf32> to vector<32x256xf32>
    %26 = arith.addf %24, %25 : vector<32x256xf32>
    %cst_23 = arith.constant 1.000000e-01 : f32
    %27 = vector.broadcast %cst_23 : f32 to vector<32x256xf32>
    %28 = arith.mulf %27, %26 : vector<32x256xf32>
    %29 = arith.maximumf %26, %28 : vector<32x256xf32>
    %c1_24 = arith.constant 1 : index
    %c0_25 = arith.constant 0 : index
    %c0_26 = arith.constant 0 : index
    %30 = vector.load %arg7[%c1_24, %c0_25, %c0_26] : memref<2x32x256xf32, #tpu.memory_space<vmem>>, vector<1x32x256xf32>
    %31 = vector.shape_cast %30 : vector<1x32x256xf32> to vector<32x256xf32>
    %32 = vector.shape_cast %29 : vector<32x256xf32> to vector<1x32x256xf32>
    tpu.vector_store %arg7[%c1_24, %c0_25, %c0_26], %32 {strides = array<i32>} : memref<2x32x256xf32, #tpu.memory_space<vmem>>, vector<1x32x256xf32>,
    return
  }
  func.func @transform_0(%arg0: i32, %arg1: i32) -> (i32, i32, i32) {
    %c0_i32 = arith.constant 0 : i32
    %c0_i32_0 = arith.constant 0 : i32
    return %arg0, %c0_i32, %arg1 : i32, i32, i32
  }
  func.func @transform_1(%arg0: i32, %arg1: i32) -> (i32, i32, i32) {
    %c0_i32 = arith.constant 0 : i32
    %c0_i32_0 = arith.constant 0 : i32
    return %arg0, %c0_i32, %arg1 : i32, i32, i32
  }
  func.func @transform_2(%arg0: i32, %arg1: i32) -> (i32, i32) {
    %c0_i32 = arith.constant 0 : i32
    %c0_i32_0 = arith.constant 0 : i32
    %c0_i32_1 = arith.constant 0 : i32
    return %c0_i32, %c0_i32_0 : i32, i32
  }
  func.func @transform_3(%arg0: i32, %arg1: i32) -> (i32, i32) {
    %c0_i32 = arith.constant 0 : i32
    %c0_i32_0 = arith.constant 0 : i32
    %c0_i32_1 = arith.constant 0 : i32
    return %c0_i32, %c0_i32_0 : i32, i32
  }
  func.func @transform_4(%arg0: i32, %arg1: i32) -> (i32, i32) {
    %c0_i32 = arith.constant 0 : i32
    %c0_i32_0 = arith.constant 0 : i32
    %c0_i32_1 = arith.constant 0 : i32
    return %c0_i32, %c0_i32_0 : i32, i32
  }
  func.func @transform_5(%arg0: i32, %arg1: i32) -> (i32, i32, i32) {
    %c0_i32 = arith.constant 0 : i32
    %c0_i32_0 = arith.constant 0 : i32
    return %arg0, %c0_i32, %arg1 : i32, i32, i32
  }
}

</mosaic_0001>

<bundles_post_ra>
// kernel: tpu_custom_call.1
= control target key start
LH: loop header
LB: loop body
LE: loop exit
PB: predicated region body
PF: predicated region fallthrough
CT: control target
= control target key end

     0   :  { %vm50_vm0 = vcmask 1043456   ;;  %v623_v4 = vmov 0.0   ;;  %vm37_vm1 = vcmask 31744   ;;  %v624_v10 = vmov 0   ;;  %s742_s0 = inlined_call_operand.vmem [shape: f32[2,4,256], index: 0, kind: input, shape index: {}]   ;;  %s743_s1 = inlined_call_operand.vmem [shape: f32[2,4,256], index: 1, kind: input, shape index: {}]   ;;  %s744_s2 = inlined_call_operand.vmem [shape: f32[32,4], index: 2, kind: input, shape index: {}]   ;;  %s745_s3 = inlined_call_operand.vmem [shape: f32[32,4], index: 3, kind: input, shape index: {}]   ;;  %s746_s4 = inlined_call_operand.vmem [shape: f32[32,1], index: 4, kind: input, shape index: {}]   ;;  %s747_s5 = inlined_call_operand.hbm [shape: f32[2,32,256], index: 5, kind: output, shape index: {}]  }
   0x1   :  { %v34_v0 = vld [vmem:[%s743_s1] sm:$0xff]  ;;  %v559_v1 = vld [vmem:[%s743_s1 + $0x8] sm:$0xff]  ;;  %119 = vmatprep.mubr.f32.mxu0 %v623_v4  ;;  %377 = vmatprep.mubr.f32.mxu1 %v623_v4 }
   0x2   :  { %v36_v2 = vcombine.high %v34_v0, %v34_v0  ;;  %v308_v3 = vcombine.high %v559_v1, %v559_v1  ;;  %v33_v5 = vld [vmem:[%s742_s0] sm:$0xff]  ;;  %v558_v6 = vld [vmem:[%s742_s0 + $0x8] sm:$0xff]  ;;  %593 = vset.pattern.permute.xlu0 %v624_v10  ;;  %594 = vset.pattern.permute.xlu1 %v624_v10 }
   0x3   :  { %v25_v7 = vld [vmem:[%s745_s3] sm:$0xff]  ;;  %v145_v8 = vcombine.high %v33_v5, %v33_v5  ;;  %v403_v9 = vcombine.high %v558_v6, %v558_v6 }
   0x4   :  { %546 = vmatprep.subr.msk.mxu0 %vm50_vm0, %v36_v2  ;;  %560 = vmatprep.subr.msk.mxu1 %vm50_vm0, %v308_v3 }
   0x5   :  { %547 = vmatpush1.msk.msra.mxu0 %vm50_vm0, %v34_v0  ;;  %561 = vmatpush1.msk.msra.mxu1 %vm50_vm0, %v559_v1 }
   0x6   :  { %548 = vmatmul.mubr.msk.f32.vlgmr.msra.gmra.mrb[0].mxu0 %vm37_vm1, %v25_v7  ;;  %552 = vmatprep.subr.msk.mxu0 %vm50_vm0, %v145_v8 }
   0x7   :  { %10 = vsyncpa [#allocation3], 0  ;;  %562 = vmatmul.mubr.msk.f32.vlgmr.msra.gmra.mrb[0].mxu1 %vm37_vm1, %v25_v7  ;;  %566 = vmatprep.subr.msk.mxu1 %vm50_vm0, %v403_v9  ;;  %v26_v11 = vld [vmem:[%s745_s3 + $0x8] sm:$0xff]  ;;  %v29_v12 = vld [vmem:[%s746_s4] sm:$0xff] }
   0x8   :  { %553 = vmatpush1.msk.msra.mxu0 %vm50_vm0, %v33_v5  ;;  %567 = vmatpush1.msk.msra.mxu1 %vm50_vm0, %v558_v6  ;;  %v31_v13 = vld [vmem:[%s746_s4 + $0x10] sm:$0xff]  ;;  %v30_v15 = vld [vmem:[%s746_s4 + $0x8] sm:$0xff]  ;;  %v32_v16 = vld [vmem:[%s746_s4 + $0x18] sm:$0xff] }
   0x9   :  { %125 = vmatprep.mubr.f32.mxu0 %v623_v4  ;;  %383 = vmatprep.mubr.f32.mxu1 %v623_v4  ;;  %v27_v14 = vld [vmem:[%s745_s3 + $0x10] sm:$0xff]  ;;  %v28_v17 = vld [vmem:[%s745_s3 + $0x18] sm:$0xff]  ;;  %v21_v18 = vld [vmem:[%s744_s2] sm:$0xff] }
   0xa   :  { %549 = vmatmul.mubr.msk.f32.gmra.mrb[2].mxu0 %vm37_vm1, %v26_v11  ;;  %253 = vperm.xlu0 %593, %v29_v12   ;;  %v22_v19 = vld [vmem:[%s744_s2 + $0x8] sm:$0xff]  ;;  %v23_v20 = vld [vmem:[%s744_s2 + $0x10] sm:$0xff]  ;;  %v24_v21 = vld [vmem:[%s744_s2 + $0x18] sm:$0xff]  ;;  %s625_s2 = smov [#allocation2]  }
   0xb   :  { %563 = vmatmul.mubr.msk.f32.gmra.mrb[2].mxu1 %vm37_vm1, %v26_v11  ;;  %131 = vmatprep.mubr.f32.mxu0 %v623_v4  ;;  %s535_s21 = sshll.u32 %s625_s2, 4  ;;  %s536_s21 = int_to_ptr.vmem [resolvable:$true] %s535_s21 }
   0xc   :  { %389 = vmatprep.mubr.f32.mxu1 %v623_v4  ;;  %263 = vperm.xlu1 %594, %v31_v13   ;;  %s599_s22 = scalar_lea.vmem %s536_s21, 2048  ;;  %p604_p1 = scmp.lt.s32.totalorder %s536_s21, %s536_s21 }
   0xd   :  { %p600_p0 = scmp.ne.s32.totalorder %s536_s21, %s599_s22  ;;  %p605_p2 = scmp.lt.s32.totalorder %s599_s22, %s599_s22 }
   0xe   :  { %550 = vmatmul.mubr.msk.f32.gmra.mrb[4].mxu0 %vm37_vm1, %v27_v14  ;;  %258 = vperm.xlu0 %593, %v30_v15  }
   0xf   :  { %564 = vmatmul.mubr.msk.f32.gmra.mrb[4].mxu1 %vm37_vm1, %v27_v14  ;;  %137 = vmatprep.mubr.f32.mxu0 %v623_v4  ;;  %p606_p3 = por %p605_p2, %p604_p1 }
  0x10   :  { %395 = vmatprep.mubr.f32.mxu1 %v623_v4  ;;  %268 = vperm.xlu1 %594, %v32_v16  }
  0x11   :  { %p607_p4 = pnand %p606_p3, %p600_p0 }
  0x12   :  { %551 = vmatmul.mubr.msk.f32.gmra.mrb[6].mxu0 %vm37_vm1, %v28_v17 }
  0x13   :  { %565 = vmatmul.mubr.msk.f32.gmra.mrb[6].mxu1 %vm37_vm1, %v28_v17  ;;  %226 = vmatprep.mubr.f32.mxu0 %v623_v4 }
  0x14   :  { %472 = vmatprep.mubr.f32.mxu1 %v623_v4 }
  0x16   :  { %554 = vmatmul.mubr.msk.f32.vlgmr.msra.gmra.mrb[0].mxu0 %vm37_vm1, %v21_v18 }
  0x17   :  { %568 = vmatmul.mubr.msk.f32.vlgmr.msra.gmra.mrb[0].mxu1 %vm37_vm1, %v21_v18  ;;  %232 = vmatprep.mubr.f32.mxu0 %v623_v4 }
  0x18   :  { %478 = vmatprep.mubr.f32.mxu1 %v623_v4 }
  0x1a   :  { %555 = vmatmul.mubr.msk.f32.gmra.mrb[2].mxu0 %vm37_vm1, %v22_v19 }
  0x1b   :  { %569 = vmatmul.mubr.msk.f32.gmra.mrb[2].mxu1 %vm37_vm1, %v22_v19  ;;  %238 = vmatprep.mubr.f32.mxu0 %v623_v4 }
  0x1c   :  { %484 = vmatprep.mubr.f32.mxu1 %v623_v4 }
  0x1e   :  { %556 = vmatmul.mubr.msk.f32.gmra.mrb[4].mxu0 %vm37_vm1, %v23_v20 }
  0x1f   :  { %570 = vmatmul.mubr.msk.f32.gmra.mrb[4].mxu1 %vm37_vm1, %v23_v20  ;;  %244 = vmatprep.mubr.f32.mxu0 %v623_v4 }
  0x20   :  { %490 = vmatprep.mubr.f32.mxu1 %v623_v4 }
  0x22   :  { %557 = vmatmul.mubr.msk.f32.gmra.mrb[6].mxu0 %vm37_vm1, %v24_v21 }
  0x23   :  { %571 = vmatmul.mubr.msk.f32.gmra.mrb[6].mxu1 %vm37_vm1, %v24_v21 }
  0x89   :  { %v254_v22 = vpop.permute.xlu0 %253 }
  0x8b   :  { %v264_v46 = vpop.permute.xlu1 %263 }
  0x8d   :  { %v259_v30 = vpop.permute.xlu0 %258 }
  0x8f   :  { %v269_v4 = vpop.permute.xlu1 %268 }
  0xe9   :  { %v228_v23 = vpop.f32.mrb[0].mxu0 }
  0xea   :  { %v271_v24 = vadd.f32 %v254_v22, %v228_v23  ;;  %v474_v25 = vpop.f32.mrb[0].mxu1  ;;  %v230_v26 = vpop.f32.mrb[1].mxu0 }
  0xeb   :  { %v497_v27 = vadd.f32 %v474_v25, %v254_v22  ;;  %v272_v28 = vadd.f32 %v254_v22, %v230_v26  ;;  %v476_v29 = vpop.f32.mrb[1].mxu1 }
  0xec   :  { %v279_v31 = vmul.f32 0.1, %v271_v24  ;;  %v498_v32 = vadd.f32 %v476_v29, %v254_v22 }
  0xed   :  { %v505_v33 = vmul.f32 0.1, %v497_v27  ;;  %v280_v34 = vmul.f32 0.1, %v272_v28  ;;  %v234_v35 = vpop.f32.mrb[2].mxu0 }
  0xee   :  { %v287_v36 = vmax.f32 %v271_v24, %v279_v31  ;;  %v506_v37 = vmul.f32 0.1, %v498_v32  ;;  %v273_v38 = vadd.f32 %v259_v30, %v234_v35  ;;  %v480_v39 = vpop.f32.mrb[2].mxu1  ;;  %v236_v40 = vpop.f32.mrb[3].mxu0 }
  0xef   :  { %v513_v41 = vmax.f32 %v497_v27, %v505_v33  ;;  %v288_v42 = vmax.f32 %v272_v28, %v280_v34  ;;  %v499_v43 = vadd.f32 %v480_v39, %v259_v30  ;;  %v274_v44 = vadd.f32 %v259_v30, %v236_v40  ;;  %v482_v45 = vpop.f32.mrb[3].mxu1 }
  0xf0   :  { %295 = vst [vmem:[#allocation2] sm:$0xff] %v287_v36  ;;  %v514_v47 = vmax.f32 %v498_v32, %v506_v37  ;;  %v281_v48 = vmul.f32 0.1, %v273_v38  ;;  %v500_v49 = vadd.f32 %v482_v45, %v259_v30 }
  0xf1   :  { %522 = vst [vmem:[#allocation2 + $0x40] sm:$0xff] %v513_v41  ;;  %296 = vst [vmem:[#allocation2 + $0x8] sm:$0xff] %v288_v42  ;;  %v507_v50 = vmul.f32 0.1, %v499_v43  ;;  %v282_v51 = vmul.f32 0.1, %v274_v44 }
  0xf2   :  { %v240_v52 = vpop.f32.mrb[4].mxu0  ;;  %523 = vst [vmem:[#allocation2 + $0x48] sm:$0xff] %v514_v47  ;;  %v289_v53 = vmax.f32 %v273_v38, %v281_v48  ;;  %v508_v54 = vmul.f32 0.1, %v500_v49  ;;  %v486_v56 = vpop.f32.mrb[4].mxu1 }
  0xf3   :  { %v275_v55 = vadd.f32 %v264_v46, %v240_v52  ;;  %v242_v57 = vpop.f32.mrb[5].mxu0  ;;  %v515_v58 = vmax.f32 %v499_v43, %v507_v50  ;;  %v290_v59 = vmax.f32 %v274_v44, %v282_v51  ;;  %v501_v60 = vadd.f32 %v486_v56, %v264_v46  ;;  %v488_v62 = vpop.f32.mrb[5].mxu1 }
  0xf4   :  { %v276_v61 = vadd.f32 %v264_v46, %v242_v57  ;;  %297 = vst [vmem:[#allocation2 + $0x10] sm:$0xff] %v289_v53  ;;  %v516_v63 = vmax.f32 %v500_v49, %v508_v54  ;;  %v502_v1 = vadd.f32 %v488_v62, %v264_v46 }
  0xf5   :  { %v283_v0 = vmul.f32 0.1, %v275_v55  ;;  %524 = vst [vmem:[#allocation2 + $0x50] sm:$0xff] %v515_v58  ;;  %298 = vst [vmem:[#allocation2 + $0x18] sm:$0xff] %v290_v59  ;;  %v509_v2 = vmul.f32 0.1, %v501_v60 }
  0xf6   :  { %v284_v3 = vmul.f32 0.1, %v276_v61  ;;  %v246_v5 = vpop.f32.mrb[6].mxu0  ;;  %525 = vst [vmem:[#allocation2 + $0x58] sm:$0xff] %v516_v63  ;;  %v510_v7 = vmul.f32 0.1, %v502_v1 }
  0xf7   :  { %v291_v6 = vmax.f32 %v275_v55, %v283_v0  ;;  %v277_v8 = vadd.f32 %v269_v4, %v246_v5  ;;  %v492_v9 = vpop.f32.mrb[6].mxu1  ;;  %v248_v10 = vpop.f32.mrb[7].mxu0  ;;  %v517_v11 = vmax.f32 %v501_v60, %v509_v2 }
  0xf8   :  { %v292_v12 = vmax.f32 %v276_v61, %v284_v3  ;;  %v503_v13 = vadd.f32 %v492_v9, %v269_v4  ;;  %v278_v14 = vadd.f32 %v269_v4, %v248_v10  ;;  %v494_v15 = vpop.f32.mrb[7].mxu1  ;;  %v518_v16 = vmax.f32 %v502_v1, %v510_v7 }
  0xf9   :  { %299 = vst [vmem:[#allocation2 + $0x20] sm:$0xff] %v291_v6  ;;  %v285_v17 = vmul.f32 0.1, %v277_v8  ;;  %v504_v18 = vadd.f32 %v494_v15, %v269_v4  ;;  %526 = vst [vmem:[#allocation2 + $0x60] sm:$0xff] %v517_v11 }
  0xfa   :  { %300 = vst [vmem:[#allocation2 + $0x28] sm:$0xff] %v292_v12  ;;  %v511_v19 = vmul.f32 0.1, %v503_v13  ;;  %v286_v20 = vmul.f32 0.1, %v278_v14  ;;  %527 = vst [vmem:[#allocation2 + $0x68] sm:$0xff] %v518_v16 }
  0xfb   :  { %v293_v21 = vmax.f32 %v277_v8, %v285_v17  ;;  %v512_v22 = vmul.f32 0.1, %v504_v18 }
  0xfc   :  { %v519_v23 = vmax.f32 %v503_v13, %v511_v19  ;;  %v294_v24 = vmax.f32 %v278_v14, %v286_v20 }
  0xfd   :  { %301 = vst [vmem:[#allocation2 + $0x30] sm:$0xff] %v293_v21  ;;  %v520_v25 = vmax.f32 %v504_v18, %v512_v22 }
  0xfe   :  { %528 = vst [vmem:[#allocation2 + $0x70] sm:$0xff] %v519_v23  ;;  %302 = vst [vmem:[#allocation2 + $0x38] sm:$0xff] %v294_v24 }
  0xff   :  { %529 = vst [vmem:[#allocation2 + $0x78] sm:$0xff] %v520_v25 }
 0x100   :  { %610 = shalt.err (!%p607_p4)
}
 0x101   :  { %s611_s25 = scalar_lea.hbm %s747_s5, 2048 }
 0x102   :  { %p612_p5 = scmp.ne.s32.totalorder %s747_s5, %s611_s25  ;;  %p615_p6 = scmp.lt.u32.totalorder %s611_s25, %s747_s5 }
 0x104   :  { %p617_p7 = pnand %p615_p6, %p612_p5 }
 0x106   :  { %620 = shalt.err (!%p617_p7)
}
 0x107   :  { %s626_s28 = smov 256   ;;  %s627_s29 = smov 16  }
 0x108   :  { %541 = dma.vmem_to_hbm [thread:$0]  %s536_s21, 2048, %s747_s5, [#allocation3], %s626_s28, %s626_s28, %s627_s29  }
 0x109   :  { %621 = dma.done.wait [#allocation3], 2048  }
 0x10a   :  { %622 = vsyncadd [#allocation3], 4294965248 }
 0x10b   :  { %545 = vsyncpa [#allocation3], 1 }

</bundles_post_ra>
